<compile_context>
chip_gen: v7x
topology: tpu7x:2x2x1
jax: 0.10.0
libtpu: 0.0.40
codegen_flags: <defaults>
</compile_context>

<pallas_src>
import functools
import math

import numpy as np
import jax
import jax.numpy as jnp
from jax import lax
from jax.experimental import pallas as pl
from jax.experimental.pallas import tpu as pltpu


def _erf_approx(z):
    # Abramowitz & Stegun 7.1.26 rational approximation, max abs error ~1.5e-7.
    a1, a2, a3, a4, a5 = 0.254829592, -0.284496736, 1.421413741, -1.453152027, 1.061405429
    p = 0.3275911
    sign = jnp.where(z >= 0.0, 1.0, -1.0)
    za = jnp.abs(z)
    t = 1.0 / (1.0 + p * za)
    poly = ((((a5 * t + a4) * t + a3) * t + a2) * t + a1) * t
    return sign * (1.0 - poly * jnp.exp(-za * za))


def _gelu(x):
    return x * 0.5 * (1.0 + _erf_approx(x * (1.0 / math.sqrt(2.0))))


def _layer_norm(x, gamma, beta, eps):
    u = jnp.mean(x, axis=-1, keepdims=True)
    xc = x - u
    var = jnp.mean(xc * xc, axis=-1, keepdims=True)
    return xc * lax.rsqrt(var + eps) * gamma + beta


def _layer_kernel(x_ref, mask_ref,
                  wqkv_ref, bqkv_ref, wo_ref, bo_ref, g1_ref, be1_ref,
                  wi1_ref, bi1_ref, wi2_ref, bi2_ref, g2_ref, be2_ref,
                  out_ref, *, num_heads, head_dim, hidden, eps):
    x = x_ref[0]          # (S, H)
    mask = mask_ref[0]    # (Sq, S) additive attention mask, Sq in {1, S}

    # --- SelfAttention -------------------------------------------------------
    # One fused QKV projection; Wq/bq already carry the 1/sqrt(head_dim) scale.
    qkv = jnp.dot(x, wqkv_ref[...], preferred_element_type=jnp.float32) + bqkv_ref[...]

    ctx_parts = []
    for h in range(num_heads):                      # static unroll over heads
        lo = h * head_dim
        qh = qkv[:, lo:lo + head_dim]
        kh = qkv[:, hidden + lo:hidden + lo + head_dim]
        vh = qkv[:, 2 * hidden + lo:2 * hidden + lo + head_dim]
        scores = lax.dot_general(qh, kh, (((1,), (1,)), ((), ())),
                                 preferred_element_type=jnp.float32) + mask
        m = jnp.max(scores, axis=-1, keepdims=True)
        p = jnp.exp(scores - m)
        probs = p / jnp.sum(p, axis=-1, keepdims=True)
        ctx_parts.append(jnp.dot(probs, vh, preferred_element_type=jnp.float32))
    ctx = jnp.concatenate(ctx_parts, axis=-1) if num_heads > 1 else ctx_parts[0]

    attn = jnp.dot(ctx, wo_ref[...], preferred_element_type=jnp.float32) + bo_ref[...]
    # out_dropout is identity (eval mode); residual + LayerNorm.
    h1 = _layer_norm(attn + x, g1_ref[...], be1_ref[...], eps)

    # --- Intermediate (FFN) --------------------------------------------------
    inter = jnp.dot(h1, wi1_ref[...], preferred_element_type=jnp.float32) + bi1_ref[...]
    inter = _gelu(inter)
    out2 = jnp.dot(inter, wi2_ref[...], preferred_element_type=jnp.float32) + bi2_ref[...]
    # hidden dropout is identity (eval mode); residual + LayerNorm.
    y = _layer_norm(out2 + h1, g2_ref[...], be2_ref[...], eps)

    out_ref[0] = y.astype(out_ref.dtype)


def layer_forward_pallas(hidden_states, attention_mask, params, num_heads, eps=1e-12):
    """Forward of `Layer` (SelfAttention + Intermediate), dropout = identity.

    hidden_states: (B, S, H) float32
    attention_mask: additive, head-invariant mask broadcastable to (B, 1, S, S)
                    (e.g. the standard BERT (B, 1, 1, S) extended mask)
    params: dict with wq,bq,wk,bk,wv,bv,wo,bo,ln1_g,ln1_b,w1,b1,w2,b2,ln2_g,ln2_b
            (weights stored (in, out) so y = x @ W + b).
    """
    B, S, H = hidden_states.shape
    head_dim = H // num_heads
    I = params["w1"].shape[1]          # intermediate size (4H)
    scale = 1.0 / math.sqrt(head_dim)

    # Fold the attention-score scale into the Q projection and fuse Q/K/V into
    # one (H, 3H) weight -> a single MXU matmul in-kernel.
    w_qkv = jnp.concatenate(
        [params["wq"].astype(jnp.float32) * scale,
         params["wk"].astype(jnp.float32),
         params["wv"].astype(jnp.float32)], axis=1)
    b_qkv = jnp.concatenate(
        [params["bq"].astype(jnp.float32) * scale,
         params["bk"].astype(jnp.float32),
         params["bv"].astype(jnp.float32)]).reshape(1, 3 * H)

    # Head-invariant additive mask. If it is query-invariant (the standard
    # (B,1,1,S) padding mask), keep it as (B,1,S) and broadcast in-kernel.
    m = jnp.asarray(attention_mask, jnp.float32)
    query_invariant = (m.ndim < 2) or (m.shape[-2] == 1)
    if query_invariant:
        mask3 = jnp.broadcast_to(m, (B, 1, 1, S))[:, 0]    # (B, 1, S)
    else:
        mask3 = jnp.broadcast_to(m, (B, 1, S, S))[:, 0]    # (B, S, S)
    Sq = mask3.shape[1]

    row = lambda v: v.astype(jnp.float32).reshape(1, -1)

    kernel = functools.partial(_layer_kernel, num_heads=num_heads,
                               head_dim=head_dim, hidden=H, eps=eps)

    out = pl.pallas_call(
        kernel,
        out_shape=jax.ShapeDtypeStruct((B, S, H), hidden_states.dtype),
        grid_spec=pltpu.PrefetchScalarGridSpec(
            num_scalar_prefetch=0,
            grid=(B,),
            in_specs=[
                pl.BlockSpec((1, S, H), lambda b: (b, 0, 0)),     # hidden_states
                pl.BlockSpec((1, Sq, S), lambda b: (b, 0, 0)),    # attention mask
                pl.BlockSpec((H, 3 * H), lambda b: (0, 0)),       # fused W_qkv (q scaled)
                pl.BlockSpec((1, 3 * H), lambda b: (0, 0)),       # fused b_qkv
                pl.BlockSpec((H, H), lambda b: (0, 0)),           # wo
                pl.BlockSpec((1, H), lambda b: (0, 0)),           # bo
                pl.BlockSpec((1, H), lambda b: (0, 0)),           # ln1 gamma
                pl.BlockSpec((1, H), lambda b: (0, 0)),           # ln1 beta
                pl.BlockSpec((H, I), lambda b: (0, 0)),           # w1
                pl.BlockSpec((1, I), lambda b: (0, 0)),           # b1
                pl.BlockSpec((I, H), lambda b: (0, 0)),           # w2
                pl.BlockSpec((1, H), lambda b: (0, 0)),           # b2
                pl.BlockSpec((1, H), lambda b: (0, 0)),           # ln2 gamma
                pl.BlockSpec((1, H), lambda b: (0, 0)),           # ln2 beta
            ],
            out_specs=pl.BlockSpec((1, S, H), lambda b: (b, 0, 0)),
        ),
        compiler_params=pltpu.CompilerParams(
            dimension_semantics=("parallel",)),   # batch rows split across TCs
    )(hidden_states.astype(jnp.float32), mask3,
      w_qkv, b_qkv,
      params["wo"].astype(jnp.float32), row(params["bo"]),
      row(params["ln1_g"]), row(params["ln1_b"]),
      params["w1"].astype(jnp.float32), row(params["b1"]),
      params["w2"].astype(jnp.float32), row(params["b2"]),
      row(params["ln2_g"]), row(params["ln2_b"]))
    return out


# ---------------- pure-JAX reference (mirrors the PyTorch module) ----------------
def _layer_ref(x, attention_mask, params, num_heads, eps=1e-12):
    B, S, H = x.shape
    dh = H // num_heads

    def ln(z, g, b):
        u = z.mean(-1, keepdims=True)
        s = ((z - u) ** 2).mean(-1, keepdims=True)
        return g * ((z - u) / jnp.sqrt(s + eps)) + b

    q = x @ params["wq"] + params["bq"]
    k = x @ params["wk"] + params["bk"]
    v = x @ params["wv"] + params["bv"]
    split = lambda t: t.reshape(B, S, num_heads, dh).transpose(0, 2, 1, 3)
    qh, kh, vh = split(q), split(k), split(v)
    scores = jnp.einsum("bhqd,bhkd->bhqk", qh, kh) / math.sqrt(dh)
    scores = scores + attention_mask
    probs = jax.nn.softmax(scores, axis=-1)
    ctx = jnp.einsum("bhqk,bhkd->bhqd", probs, vh).transpose(0, 2, 1, 3).reshape(B, S, H)
    attn = ctx @ params["wo"] + params["bo"]
    h1 = ln(attn + x, params["ln1_g"], params["ln1_b"])
    inter = h1 @ params["w1"] + params["b1"]
    inter = inter * 0.5 * (1.0 + jax.scipy.special.erf(inter / math.sqrt(2.0)))
    out2 = inter @ params["w2"] + params["b2"]
    return ln(out2 + h1, params["ln2_g"], params["ln2_b"])


if __name__ == "__main__":
    B, S, H, num_heads = 2, 8, 32, 2       # batch, seq, hidden, heads
    I = 4 * H

    key = jax.random.PRNGKey(0)
    keys = jax.random.split(key, 16)
    init = lambda k, shape: 0.1 * jax.random.normal(k, shape, dtype=jnp.float32)

    params = {
        "wq": init(keys[0], (H, H)), "bq": init(keys[1], (H,)),
        "wk": init(keys[2], (H, H)), "bk": init(keys[3], (H,)),
        "wv": init(keys[4], (H, H)), "bv": init(keys[5], (H,)),
        "wo": init(keys[6], (H, H)), "bo": init(keys[7], (H,)),
        "ln1_g": jnp.ones((H,), jnp.float32), "ln1_b": jnp.zeros((H,), jnp.float32),
        "w1": init(keys[8], (H, I)), "b1": init(keys[9], (I,)),
        "w2": init(keys[10], (I, H)), "b2": init(keys[11], (H,)),
        "ln2_g": jnp.ones((H,), jnp.float32), "ln2_b": jnp.zeros((H,), jnp.float32),
    }

    x = jax.random.normal(keys[12], (B, S, H), dtype=jnp.float32)
    # Standard BERT-style extended padding mask: 0 for valid, -10000 for padded keys.
    lengths = jnp.array([S, S - 3], dtype=jnp.int32)
    valid = (jnp.arange(S)[None, :] < lengths[:, None]).astype(jnp.float32)   # (B, S)
    attention_mask = (1.0 - valid)[:, None, None, :] * -10000.0               # (B,1,1,S)

    out = layer_forward_pallas(x, attention_mask, params, num_heads)
    out = jax.block_until_ready(out)

    ref = _layer_ref(x, attention_mask, params, num_heads)
    np.testing.assert_allclose(np.asarray(out), np.asarray(ref), rtol=2e-3, atol=2e-3)

    print("KERNEL_OK")
</pallas_src>

<mosaic_0001>
module attributes {stable_mosaic.version = 11 : i64} {
  func.func @_layer_kernel(%arg0: i32, %arg1: memref<1x8x32xf32, #tpu.memory_space<vmem>>, %arg2: memref<1x1x8xf32, #tpu.memory_space<vmem>>, %arg3: memref<32x96xf32, #tpu.memory_space<vmem>>, %arg4: memref<1x96xf32, #tpu.memory_space<vmem>>, %arg5: memref<32x32xf32, #tpu.memory_space<vmem>>, %arg6: memref<1x32xf32, #tpu.memory_space<vmem>>, %arg7: memref<1x32xf32, #tpu.memory_space<vmem>>, %arg8: memref<1x32xf32, #tpu.memory_space<vmem>>, %arg9: memref<32x128xf32, #tpu.memory_space<vmem>>, %arg10: memref<1x128xf32, #tpu.memory_space<vmem>>, %arg11: memref<128x32xf32, #tpu.memory_space<vmem>>, %arg12: memref<1x32xf32, #tpu.memory_space<vmem>>, %arg13: memref<1x32xf32, #tpu.memory_space<vmem>>, %arg14: memref<1x32xf32, #tpu.memory_space<vmem>>, %arg15: memref<1x8x32xf32, #tpu.memory_space<vmem>>) attributes {dimension_semantics = [#tpu.dimension_semantics<parallel>], iteration_bounds = array<i64: 2>, scalar_prefetch = 0 : i64, scratch_operands = 0 : i64, tpu.core_type = #tpu.core_type<tc>, window_params = [{transform_indices = @transform_0, window_bounds = array<i64: 1, 8, 32>}, {transform_indices = @transform_1, window_bounds = array<i64: 1, 1, 8>}, {pipeline_mode = #tpu.pipeline_mode<synchronous>, transform_indices = @transform_2, window_bounds = array<i64: 32, 96>}, {pipeline_mode = #tpu.pipeline_mode<synchronous>, transform_indices = @transform_3, window_bounds = array<i64: 1, 96>}, {pipeline_mode = #tpu.pipeline_mode<synchronous>, transform_indices = @transform_4, window_bounds = array<i64: 32, 32>}, {pipeline_mode = #tpu.pipeline_mode<synchronous>, transform_indices = @transform_5, window_bounds = array<i64: 1, 32>}, {pipeline_mode = #tpu.pipeline_mode<synchronous>, transform_indices = @transform_6, window_bounds = array<i64: 1, 32>}, {pipeline_mode = #tpu.pipeline_mode<synchronous>, transform_indices = @transform_7, window_bounds = array<i64: 1, 32>}, {pipeline_mode = #tpu.pipeline_mode<synchronous>, transform_indices = @transform_8, window_bounds = array<i64: 32, 128>}, {pipeline_mode = #tpu.pipeline_mode<synchronous>, transform_indices = @transform_9, window_bounds = array<i64: 1, 128>}, {pipeline_mode = #tpu.pipeline_mode<synchronous>, transform_indices = @transform_10, window_bounds = array<i64: 128, 32>}, {pipeline_mode = #tpu.pipeline_mode<synchronous>, transform_indices = @transform_11, window_bounds = array<i64: 1, 32>}, {pipeline_mode = #tpu.pipeline_mode<synchronous>, transform_indices = @transform_12, window_bounds = array<i64: 1, 32>}, {pipeline_mode = #tpu.pipeline_mode<synchronous>, transform_indices = @transform_13, window_bounds = array<i64: 1, 32>}, {transform_indices = @transform_14, window_bounds = array<i64: 1, 8, 32>}]} {
    %c0 = arith.constant 0 : index
    %c0_0 = arith.constant 0 : index
    %c0_1 = arith.constant 0 : index
    %0 = vector.load %arg1[%c0, %c0_0, %c0_1] : memref<1x8x32xf32, #tpu.memory_space<vmem>>, vector<1x8x32xf32>
    %1 = vector.shape_cast %0 : vector<1x8x32xf32> to vector<8x32xf32>
    %c0_2 = arith.constant 0 : index
    %c0_3 = arith.constant 0 : index
    %c0_4 = arith.constant 0 : index
    %2 = vector.load %arg2[%c0_2, %c0_3, %c0_4] : memref<1x1x8xf32, #tpu.memory_space<vmem>>, vector<1x1x8xf32>
    %3 = vector.shape_cast %2 : vector<1x1x8xf32> to vector<1x8xf32>
    %c0_5 = arith.constant 0 : index
    %c0_6 = arith.constant 0 : index
    %4 = vector.load %arg3[%c0_5, %c0_6] : memref<32x96xf32, #tpu.memory_space<vmem>>, vector<32x96xf32>
    %cst = arith.constant dense<0.000000e+00> : vector<8x96xf32>
    %5 = tpu.matmul %1, %4, %cst {dimension_numbers = #tpu.dot_dimension_numbers<[1], [0], [0], [1], [0, 0, 1, 1], [], []>} : vector<8x32xf32>, vector<32x96xf32>, vector<8x96xf32> -> vector<8x96xf32>
    %c0_7 = arith.constant 0 : index
    %c0_8 = arith.constant 0 : index
    %6 = vector.load %arg4[%c0_7, %c0_8] : memref<1x96xf32, #tpu.memory_space<vmem>>, vector<1x96xf32>
    %7 = vector.broadcast %6 : vector<1x96xf32> to vector<8x96xf32>
    %8 = arith.addf %5, %7 : vector<8x96xf32>
    %9 = vector.extract_strided_slice %8 {offsets = [0, 0], sizes = [8, 16], strides = [1, 1]} : vector<8x96xf32> to vector<8x16xf32>
    %10 = vector.extract_strided_slice %8 {offsets = [0, 32], sizes = [8, 16], strides = [1, 1]} : vector<8x96xf32> to vector<8x16xf32>
    %11 = vector.extract_strided_slice %8 {offsets = [0, 64], sizes = [8, 16], strides = [1, 1]} : vector<8x96xf32> to vector<8x16xf32>
    %cst_9 = arith.constant dense<0.000000e+00> : vector<8x8xf32>
    %12 = tpu.matmul %9, %10, %cst_9 {dimension_numbers = #tpu.dot_dimension_numbers<[1], [1], [0], [0], [0, 0, 1, 0], [], []>} : vector<8x16xf32>, vector<8x16xf32>, vector<8x8xf32> -> vector<8x8xf32>
    %13 = vector.broadcast %3 : vector<1x8xf32> to vector<8x8xf32>
    %14 = arith.addf %12, %13 : vector<8x8xf32>
    %cst_10 = arith.constant dense<0xFF800000> : vector<8xf32>
    %15 = vector.multi_reduction <maximumf>, %14, %cst_10 [1] : vector<8x8xf32> to vector<8xf32>
    %16 = vector.shape_cast %15 : vector<8xf32> to vector<8x1xf32>
    %17 = vector.broadcast %16 : vector<8x1xf32> to vector<8x8xf32>
    %18 = arith.subf %14, %17 : vector<8x8xf32>
    %19 = math.exp %18 : vector<8x8xf32>
    %cst_11 = arith.constant dense<0.000000e+00> : vector<8xf32>
    %20 = vector.multi_reduction <add>, %19, %cst_11 [1] : vector<8x8xf32> to vector<8xf32>
    %21 = vector.shape_cast %20 : vector<8xf32> to vector<8x1xf32>
    %22 = vector.broadcast %21 : vector<8x1xf32> to vector<8x8xf32>
    %23 = arith.divf %19, %22 : vector<8x8xf32>
    %cst_12 = arith.constant dense<0.000000e+00> : vector<8x16xf32>
    %24 = tpu.matmul %23, %11, %cst_12 {dimension_numbers = #tpu.dot_dimension_numbers<[1], [0], [0], [1], [0, 0, 1, 1], [], []>} : vector<8x8xf32>, vector<8x16xf32>, vector<8x16xf32> -> vector<8x16xf32>
    %25 = vector.extract_strided_slice %8 {offsets = [0, 16], sizes = [8, 16], strides = [1, 1]} : vector<8x96xf32> to vector<8x16xf32>
    %26 = vector.extract_strided_slice %8 {offsets = [0, 48], sizes = [8, 16], strides = [1, 1]} : vector<8x96xf32> to vector<8x16xf32>
    %27 = vector.extract_strided_slice %8 {offsets = [0, 80], sizes = [8, 16], strides = [1, 1]} : vector<8x96xf32> to vector<8x16xf32>
    %cst_13 = arith.constant dense<0.000000e+00> : vector<8x8xf32>
    %28 = tpu.matmul %25, %26, %cst_13 {dimension_numbers = #tpu.dot_dimension_numbers<[1], [1], [0], [0], [0, 0, 1, 0], [], []>} : vector<8x16xf32>, vector<8x16xf32>, vector<8x8xf32> -> vector<8x8xf32>
    %29 = vector.broadcast %3 : vector<1x8xf32> to vector<8x8xf32>
    %30 = arith.addf %28, %29 : vector<8x8xf32>
    %cst_14 = arith.constant dense<0xFF800000> : vector<8xf32>
    %31 = vector.multi_reduction <maximumf>, %30, %cst_14 [1] : vector<8x8xf32> to vector<8xf32>
    %32 = vector.shape_cast %31 : vector<8xf32> to vector<8x1xf32>
    %33 = vector.broadcast %32 : vector<8x1xf32> to vector<8x8xf32>
    %34 = arith.subf %30, %33 : vector<8x8xf32>
    %35 = math.exp %34 : vector<8x8xf32>
    %cst_15 = arith.constant dense<0.000000e+00> : vector<8xf32>
    %36 = vector.multi_reduction <add>, %35, %cst_15 [1] : vector<8x8xf32> to vector<8xf32>
    %37 = vector.shape_cast %36 : vector<8xf32> to vector<8x1xf32>
    %38 = vector.broadcast %37 : vector<8x1xf32> to vector<8x8xf32>
    %39 = arith.divf %35, %38 : vector<8x8xf32>
    %cst_16 = arith.constant dense<0.000000e+00> : vector<8x16xf32>
    %40 = tpu.matmul %39, %27, %cst_16 {dimension_numbers = #tpu.dot_dimension_numbers<[1], [0], [0], [1], [0, 0, 1, 1], [], []>} : vector<8x8xf32>, vector<8x16xf32>, vector<8x16xf32> -> vector<8x16xf32>
    %41 = tpu.concatenate %24, %40 in 1 : vector<8x16xf32>, vector<8x16xf32> -> vector<8x32xf32>
    %c0_17 = arith.constant 0 : index
    %c0_18 = arith.constant 0 : index
    %42 = vector.load %arg5[%c0_17, %c0_18] : memref<32x32xf32, #tpu.memory_space<vmem>>, vector<32x32xf32>
    %cst_19 = arith.constant dense<0.000000e+00> : vector<8x32xf32>
    %43 = tpu.matmul %41, %42, %cst_19 {dimension_numbers = #tpu.dot_dimension_numbers<[1], [0], [0], [1], [0, 0, 1, 1], [], []>} : vector<8x32xf32>, vector<32x32xf32>, vector<8x32xf32> -> vector<8x32xf32>
    %c0_20 = arith.constant 0 : index
    %c0_21 = arith.constant 0 : index
    %44 = vector.load %arg6[%c0_20, %c0_21] : memref<1x32xf32, #tpu.memory_space<vmem>>, vector<1x32xf32>
    %45 = vector.broadcast %44 : vector<1x32xf32> to vector<8x32xf32>
    %46 = arith.addf %43, %45 : vector<8x32xf32>
    %47 = arith.addf %46, %1 : vector<8x32xf32>
    %c0_22 = arith.constant 0 : index
    %c0_23 = arith.constant 0 : index
    %48 = vector.load %arg7[%c0_22, %c0_23] : memref<1x32xf32, #tpu.memory_space<vmem>>, vector<1x32xf32>
    %c0_24 = arith.constant 0 : index
    %c0_25 = arith.constant 0 : index
    %49 = vector.load %arg8[%c0_24, %c0_25] : memref<1x32xf32, #tpu.memory_space<vmem>>, vector<1x32xf32>
    %cst_26 = arith.constant dense<0.000000e+00> : vector<8xf32>
    %50 = vector.multi_reduction <add>, %47, %cst_26 [1] : vector<8x32xf32> to vector<8xf32>
    %51 = vector.shape_cast %50 : vector<8xf32> to vector<8x1xf32>
    %cst_27 = arith.constant 3.200000e+01 : f32
    %52 = vector.broadcast %cst_27 : f32 to vector<8x1xf32>
    %53 = arith.divf %51, %52 : vector<8x1xf32>
    %54 = vector.broadcast %53 : vector<8x1xf32> to vector<8x32xf32>
    %55 = arith.subf %47, %54 : vector<8x32xf32>
    %56 = arith.mulf %55, %55 : vector<8x32xf32>
    %cst_28 = arith.constant dense<0.000000e+00> : vector<8xf32>
    %57 = vector.multi_reduction <add>, %56, %cst_28 [1] : vector<8x32xf32> to vector<8xf32>
    %58 = vector.shape_cast %57 : vector<8xf32> to vector<8x1xf32>
    %cst_29 = arith.constant 3.200000e+01 : f32
    %59 = vector.broadcast %cst_29 : f32 to vector<8x1xf32>
    %60 = arith.divf %58, %59 : vector<8x1xf32>
    %cst_30 = arith.constant 9.99999996E-13 : f32
    %61 = vector.broadcast %cst_30 : f32 to vector<8x1xf32>
    %62 = arith.addf %60, %61 : vector<8x1xf32>
    %63 = math.rsqrt %62 : vector<8x1xf32>
    %64 = vector.broadcast %63 : vector<8x1xf32> to vector<8x32xf32>
    %65 = arith.mulf %55, %64 : vector<8x32xf32>
    %66 = vector.broadcast %48 : vector<1x32xf32> to vector<8x32xf32>
    %67 = arith.mulf %65, %66 : vector<8x32xf32>
    %68 = vector.broadcast %49 : vector<1x32xf32> to vector<8x32xf32>
    %69 = arith.addf %67, %68 : vector<8x32xf32>
    %c0_31 = arith.constant 0 : index
    %c0_32 = arith.constant 0 : index
    %70 = vector.load %arg9[%c0_31, %c0_32] : memref<32x128xf32, #tpu.memory_space<vmem>>, vector<32x128xf32>
    %cst_33 = arith.constant dense<0.000000e+00> : vector<8x128xf32>
    %71 = tpu.matmul %69, %70, %cst_33 {dimension_numbers = #tpu.dot_dimension_numbers<[1], [0], [0], [1], [0, 0, 1, 1], [], []>} : vector<8x32xf32>, vector<32x128xf32>, vector<8x128xf32> -> vector<8x128xf32>
    %c0_34 = arith.constant 0 : index
    %c0_35 = arith.constant 0 : index
    %72 = vector.load %arg10[%c0_34, %c0_35] : memref<1x128xf32, #tpu.memory_space<vmem>>, vector<1x128xf32>
    %73 = vector.broadcast %72 : vector<1x128xf32> to vector<8x128xf32>
    %74 = arith.addf %71, %73 : vector<8x128xf32>
    %cst_36 = arith.constant 5.000000e-01 : f32
    %75 = vector.broadcast %cst_36 : f32 to vector<8x128xf32>
    %76 = arith.mulf %74, %75 : vector<8x128xf32>
    %cst_37 = arith.constant 0.707106769 : f32
    %77 = vector.broadcast %cst_37 : f32 to vector<8x128xf32>
    %78 = arith.mulf %74, %77 : vector<8x128xf32>
    %cst_38 = arith.constant 0.000000e+00 : f32
    %79 = vector.broadcast %cst_38 : f32 to vector<8x128xf32>
    %80 = arith.cmpf oge, %78, %79 : vector<8x128xf32>
    %cst_39 = arith.constant 1.000000e+00 : f32
    %cst_40 = arith.constant -1.000000e+00 : f32
    %81 = vector.broadcast %cst_39 : f32 to vector<8x128xf32>
    %82 = vector.broadcast %cst_40 : f32 to vector<8x128xf32>
    %83 = arith.select %80, %81, %82 : vector<8x128xi1>, vector<8x128xf32>
    %84 = math.absf %78 : vector<8x128xf32>
    %cst_41 = arith.constant 0.327591091 : f32
    %85 = vector.broadcast %cst_41 : f32 to vector<8x128xf32>
    %86 = arith.mulf %85, %84 : vector<8x128xf32>
    %cst_42 = arith.constant 1.000000e+00 : f32
    %87 = vector.broadcast %cst_42 : f32 to vector<8x128xf32>
    %88 = arith.addf %87, %86 : vector<8x128xf32>
    %cst_43 = arith.constant 1.000000e+00 : f32
    %89 = vector.broadcast %cst_43 : f32 to vector<8x128xf32>
    %90 = arith.divf %89, %88 : vector<8x128xf32>
    %cst_44 = arith.constant 1.06140542 : f32
    %91 = vector.broadcast %cst_44 : f32 to vector<8x128xf32>
    %92 = arith.mulf %91, %90 : vector<8x128xf32>
    %cst_45 = arith.constant -1.45315206 : f32
    %93 = vector.broadcast %cst_45 : f32 to vector<8x128xf32>
    %94 = arith.addf %92, %93 : vector<8x128xf32>
    %95 = arith.mulf %94, %90 : vector<8x128xf32>
    %cst_46 = arith.constant 1.42141378 : f32
    %96 = vector.broadcast %cst_46 : f32 to vector<8x128xf32>
    %97 = arith.addf %95, %96 : vector<8x128xf32>
    %98 = arith.mulf %97, %90 : vector<8x128xf32>
    %cst_47 = arith.constant -0.284496725 : f32
    %99 = vector.broadcast %cst_47 : f32 to vector<8x128xf32>
    %100 = arith.addf %98, %99 : vector<8x128xf32>
    %101 = arith.mulf %100, %90 : vector<8x128xf32>
    %cst_48 = arith.constant 0.254829586 : f32
    %102 = vector.broadcast %cst_48 : f32 to vector<8x128xf32>
    %103 = arith.addf %101, %102 : vector<8x128xf32>
    %104 = arith.mulf %103, %90 : vector<8x128xf32>
    %cst_49 = arith.constant 0.000000e+00 : f32
    %105 = vector.broadcast %cst_49 : f32 to vector<8x128xf32>
    %106 = arith.subf %105, %84 : vector<8x128xf32>
    %107 = arith.mulf %106, %84 : vector<8x128xf32>
    %108 = math.exp %107 : vector<8x128xf32>
    %109 = arith.mulf %104, %108 : vector<8x128xf32>
    %cst_50 = arith.constant 1.000000e+00 : f32
    %110 = vector.broadcast %cst_50 : f32 to vector<8x128xf32>
    %111 = arith.subf %110, %109 : vector<8x128xf32>
    %112 = arith.mulf %83, %111 : vector<8x128xf32>
    %cst_51 = arith.constant 1.000000e+00 : f32
    %113 = vector.broadcast %cst_51 : f32 to vector<8x128xf32>
    %114 = arith.addf %113, %112 : vector<8x128xf32>
    %115 = arith.mulf %76, %114 : vector<8x128xf32>
    %c0_52 = arith.constant 0 : index
    %c0_53 = arith.constant 0 : index
    %116 = vector.load %arg11[%c0_52, %c0_53] : memref<128x32xf32, #tpu.memory_space<vmem>>, vector<128x32xf32>
    %cst_54 = arith.constant dense<0.000000e+00> : vector<8x32xf32>
    %117 = tpu.matmul %115, %116, %cst_54 {dimension_numbers = #tpu.dot_dimension_numbers<[1], [0], [0], [1], [0, 0, 1, 1], [], []>} : vector<8x128xf32>, vector<128x32xf32>, vector<8x32xf32> -> vector<8x32xf32>
    %c0_55 = arith.constant 0 : index
    %c0_56 = arith.constant 0 : index
    %118 = vector.load %arg12[%c0_55, %c0_56] : memref<1x32xf32, #tpu.memory_space<vmem>>, vector<1x32xf32>
    %119 = vector.broadcast %118 : vector<1x32xf32> to vector<8x32xf32>
    %120 = arith.addf %117, %119 : vector<8x32xf32>
    %121 = arith.addf %120, %69 : vector<8x32xf32>
    %c0_57 = arith.constant 0 : index
    %c0_58 = arith.constant 0 : index
    %122 = vector.load %arg13[%c0_57, %c0_58] : memref<1x32xf32, #tpu.memory_space<vmem>>, vector<1x32xf32>
    %c0_59 = arith.constant 0 : index
    %c0_60 = arith.constant 0 : index
    %123 = vector.load %arg14[%c0_59, %c0_60] : memref<1x32xf32, #tpu.memory_space<vmem>>, vector<1x32xf32>
    %cst_61 = arith.constant dense<0.000000e+00> : vector<8xf32>
    %124 = vector.multi_reduction <add>, %121, %cst_61 [1] : vector<8x32xf32> to vector<8xf32>
    %125 = vector.shape_cast %124 : vector<8xf32> to vector<8x1xf32>
    %cst_62 = arith.constant 3.200000e+01 : f32
    %126 = vector.broadcast %cst_62 : f32 to vector<8x1xf32>
    %127 = arith.divf %125, %126 : vector<8x1xf32>
    %128 = vector.broadcast %127 : vector<8x1xf32> to vector<8x32xf32>
    %129 = arith.subf %121, %128 : vector<8x32xf32>
    %130 = arith.mulf %129, %129 : vector<8x32xf32>
    %cst_63 = arith.constant dense<0.000000e+00> : vector<8xf32>
    %131 = vector.multi_reduction <add>, %130, %cst_63 [1] : vector<8x32xf32> to vector<8xf32>
    %132 = vector.shape_cast %131 : vector<8xf32> to vector<8x1xf32>
    %cst_64 = arith.constant 3.200000e+01 : f32
    %133 = vector.broadcast %cst_64 : f32 to vector<8x1xf32>
    %134 = arith.divf %132, %133 : vector<8x1xf32>
    %cst_65 = arith.constant 9.99999996E-13 : f32
    %135 = vector.broadcast %cst_65 : f32 to vector<8x1xf32>
    %136 = arith.addf %134, %135 : vector<8x1xf32>
    %137 = math.rsqrt %136 : vector<8x1xf32>
    %138 = vector.broadcast %137 : vector<8x1xf32> to vector<8x32xf32>
    %139 = arith.mulf %129, %138 : vector<8x32xf32>
    %140 = vector.broadcast %122 : vector<1x32xf32> to vector<8x32xf32>
    %141 = arith.mulf %139, %140 : vector<8x32xf32>
    %142 = vector.broadcast %123 : vector<1x32xf32> to vector<8x32xf32>
    %143 = arith.addf %141, %142 : vector<8x32xf32>
    %c0_66 = arith.constant 0 : index
    %c0_67 = arith.constant 0 : index
    %c0_68 = arith.constant 0 : index
    %144 = vector.load %arg15[%c0_66, %c0_67, %c0_68] : memref<1x8x32xf32, #tpu.memory_space<vmem>>, vector<1x8x32xf32>
    %145 = vector.shape_cast %144 : vector<1x8x32xf32> to vector<8x32xf32>
    %146 = vector.shape_cast %143 : vector<8x32xf32> to vector<1x8x32xf32>
    tpu.vector_store %arg15[%c0_66, %c0_67, %c0_68], %146 {strides = array<i32>} : memref<1x8x32xf32, #tpu.memory_space<vmem>>, vector<1x8x32xf32>,
    return
  }
  func.func @transform_0(%arg0: i32) -> (i32, i32, i32) {
    %c0_i32 = arith.constant 0 : i32
    %c0_i32_0 = arith.constant 0 : i32
    %c0_i32_1 = arith.constant 0 : i32
    return %arg0, %c0_i32, %c0_i32_0 : i32, i32, i32
  }
  func.func @transform_1(%arg0: i32) -> (i32, i32, i32) {
    %c0_i32 = arith.constant 0 : i32
    %c0_i32_0 = arith.constant 0 : i32
    %c0_i32_1 = arith.constant 0 : i32
    return %arg0, %c0_i32, %c0_i32_0 : i32, i32, i32
  }
  func.func @transform_2(%arg0: i32) -> (i32, i32) {
    %c0_i32 = arith.constant 0 : i32
    %c0_i32_0 = arith.constant 0 : i32
    %c0_i32_1 = arith.constant 0 : i32
    return %c0_i32, %c0_i32_0 : i32, i32
  }
  func.func @transform_3(%arg0: i32) -> (i32, i32) {
    %c0_i32 = arith.constant 0 : i32
    %c0_i32_0 = arith.constant 0 : i32
    %c0_i32_1 = arith.constant 0 : i32
    return %c0_i32, %c0_i32_0 : i32, i32
  }
  func.func @transform_4(%arg0: i32) -> (i32, i32) {
    %c0_i32 = arith.constant 0 : i32
    %c0_i32_0 = arith.constant 0 : i32
    %c0_i32_1 = arith.constant 0 : i32
    return %c0_i32, %c0_i32_0 : i32, i32
  }
  func.func @transform_5(%arg0: i32) -> (i32, i32) {
    %c0_i32 = arith.constant 0 : i32
    %c0_i32_0 = arith.constant 0 : i32
    %c0_i32_1 = arith.constant 0 : i32
    return %c0_i32, %c0_i32_0 : i32, i32
  }
  func.func @transform_6(%arg0: i32) -> (i32, i32) {
    %c0_i32 = arith.constant 0 : i32
    %c0_i32_0 = arith.constant 0 : i32
    %c0_i32_1 = arith.constant 0 : i32
    return %c0_i32, %c0_i32_0 : i32, i32
  }
  func.func @transform_7(%arg0: i32) -> (i32, i32) {
    %c0_i32 = arith.constant 0 : i32
    %c0_i32_0 = arith.constant 0 : i32
    %c0_i32_1 = arith.constant 0 : i32
    return %c0_i32, %c0_i32_0 : i32, i32
  }
  func.func @transform_8(%arg0: i32) -> (i32, i32) {
    %c0_i32 = arith.constant 0 : i32
    %c0_i32_0 = arith.constant 0 : i32
    %c0_i32_1 = arith.constant 0 : i32
    return %c0_i32, %c0_i32_0 : i32, i32
  }
  func.func @transform_9(%arg0: i32) -> (i32, i32) {
    %c0_i32 = arith.constant 0 : i32
    %c0_i32_0 = arith.constant 0 : i32
    %c0_i32_1 = arith.constant 0 : i32
    return %c0_i32, %c0_i32_0 : i32, i32
  }
  func.func @transform_10(%arg0: i32) -> (i32, i32) {
    %c0_i32 = arith.constant 0 : i32
    %c0_i32_0 = arith.constant 0 : i32
    %c0_i32_1 = arith.constant 0 : i32
    return %c0_i32, %c0_i32_0 : i32, i32
  }
  func.func @transform_11(%arg0: i32) -> (i32, i32) {
    %c0_i32 = arith.constant 0 : i32
    %c0_i32_0 = arith.constant 0 : i32
    %c0_i32_1 = arith.constant 0 : i32
    return %c0_i32, %c0_i32_0 : i32, i32
  }
  func.func @transform_12(%arg0: i32) -> (i32, i32) {
    %c0_i32 = arith.constant 0 : i32
    %c0_i32_0 = arith.constant 0 : i32
    %c0_i32_1 = arith.constant 0 : i32
    return %c0_i32, %c0_i32_0 : i32, i32
  }
  func.func @transform_13(%arg0: i32) -> (i32, i32) {
    %c0_i32 = arith.constant 0 : i32
    %c0_i32_0 = arith.constant 0 : i32
    %c0_i32_1 = arith.constant 0 : i32
    return %c0_i32, %c0_i32_0 : i32, i32
  }
  func.func @transform_14(%arg0: i32) -> (i32, i32, i32) {
    %c0_i32 = arith.constant 0 : i32
    %c0_i32_0 = arith.constant 0 : i32
    %c0_i32_1 = arith.constant 0 : i32
    return %arg0, %c0_i32, %c0_i32_0 : i32, i32, i32
  }
}

</mosaic_0001>

<bundles_post_ra>
// kernel: tpu_custom_call.1
= control target key start
LH: loop header
LB: loop body
LE: loop exit
PB: predicated region body
PF: predicated region fallthrough
CT: control target
= control target key end

     0   :  { %s2027_s0 = inlined_call_operand.vmem [shape: f32[2,8,32], index: 0, kind: input, shape index: {}]   ;;  %s2028_s1 = inlined_call_operand.vmem [shape: f32[2,1,8], index: 1, kind: input, shape index: {}]   ;;  %s2029_s2 = inlined_call_operand.vmem [shape: f32[32,96], index: 2, kind: input, shape index: {}]   ;;  %s2030_s3 = inlined_call_operand.vmem [shape: f32[1,96], index: 3, kind: input, shape index: {}]   ;;  %s2031_s4 = inlined_call_operand.vmem [shape: f32[32,32], index: 4, kind: input, shape index: {}]   ;;  %s2032_s5 = inlined_call_operand.vmem [shape: f32[1,32], index: 5, kind: input, shape index: {}]   ;;  %s2033_s6 = inlined_call_operand.vmem [shape: f32[1,32], index: 6, kind: input, shape index: {}]   ;;  %s2034_s7 = inlined_call_operand.vmem [shape: f32[1,32], index: 7, kind: input, shape index: {}]   ;;  %s2035_s8 = inlined_call_operand.vmem [shape: f32[32,128], index: 8, kind: input, shape index: {}]   ;;  %s2036_s9 = inlined_call_operand.vmem [shape: f32[1,128], index: 9, kind: input, shape index: {}]   ;;  %s2037_s10 = inlined_call_operand.vmem [shape: f32[128,32], index: 10, kind: input, shape index: {}]   ;;  %s2038_s11 = inlined_call_operand.vmem [shape: f32[1,32], index: 11, kind: input, shape index: {}]   ;;  %s2039_s12 = inlined_call_operand.vmem [shape: f32[1,32], index: 12, kind: input, shape index: {}]   ;;  %s2040_s13 = inlined_call_operand.vmem [shape: f32[1,32], index: 13, kind: input, shape index: {}]   ;;  %s2041_s14 = inlined_call_operand.hbm [shape: f32[2,8,32], index: 14, kind: output, shape index: {}]  }
   0x1   :  { %2042 = sst [smem:[#allocation6_spill]] %s2027_s0 }
   0x2   :  { %2043 = sst [smem:[#allocation7_spill]] %s2028_s1 }
   0x3   :  { %2044 = sst [smem:[#allocation8_spill]] %s2029_s2 }
   0x4   :  { %2045 = sst [smem:[#allocation9_spill]] %s2030_s3 }
   0x5   :  { %19 = vsyncpa [#allocation3], 0 }
   0x6   :  { %21 = vsyncpa [#allocation3 + $0x1], 0  ;;  %s1751_s29 = smov 0   ;;  %s1753_s30 = smov 0  }
   0x7   :  { %s1755_s15 = smov 0   ;;  %s1757_s16 = smov 0  }
   0x8 LB: > { %s1772_s17 = sadd.s32 4294967295, %s1663_s16   ;;  %s1338_s18 = sadd.s32 4294967294, %s1663_s16   ;;  %s1663_s16 = sphi %s1757_s16, %s2057_s16   ;;  %s1659_s15 = sphi %s1755_s15, %s2056_s15   ;;  %s1655_s30 = sphi %s1753_s30, %s2055_s30   ;;  %s1651_s29 = sphi %s1751_s29, %s2054_s29  }
   0x9   : > { %s1776_s19 = sadd.s32 1, %s1663_s16   ;;  %s338_s20 = sadd.s32 1, %s1659_s15 }
   0xa   : > { %s335_s21 = ssub.s32 %s1663_s16, %s1776_s19  ;;  %p348_p0 = scmp.ne.s32.totalorder %s1659_s15, %s1655_s30 }
   0xb   : > { %p336_p1 = scmp.eq.s32.totalorder %s335_s21, 0  ;;  %p349_p2 = scmp.eq.s32.totalorder %s1772_s17, 1 }
   0xc   : > { %p354_p3 = scmp.ne.s32.totalorder %s1655_s30, %s1651_s29  ;;  %p355_p4 = scmp.eq.s32.totalorder %s1338_s18, 1 }
   0xd   : > { %s1787_s22 = scalar_select %p336_p1, %s1659_s15, %s338_s20  }
   0xe   : > { %p1789_p5 = por %p349_p2, %p348_p0  ;;  %p1793_p6 = por %p355_p4, %p354_p3 }
   0xf   : > { %2046 = sst [smem:[#allocation5_spill]] %s1787_s22  ;;  %p1341_p7 = scmp.ge.s32.totalorder %s1663_s16, 1 }
  0x10   : > { %p422_p8 = scmp.lt.s32.totalorder %s1663_s16, 3 }
  0x12   : > { %p423_p9 = pnand %p1341_p7, %p422_p8 }
  0x13   : > { %s2049_s2 = sld [smem:[#allocation8_spill]] (!%p423_p9)  ;;  %v1665_v3 = vmov (!%p423_p9), 0.0|0.0   ;;  %vm1666_vm0 = vmmov (!%p423_p9), 0   ;;  %v1667_v6 = vmov (!%p423_p9), 0.0   ;;  %p470_p10 = scmp.lt.s32.totalorder (!%p423_p9), %s1772_s17, 1  ;;  %vm490_vm1 = vcmask (!%p423_p9), 261120  }
  0x14   : > { %426 = sbr.rel (%p423_p9) target bundleno = 2560 (0xa00), region = 76  ;;  %1494 = vmatprep.subr.bf16.mxu1 (!%p423_p9), %v1665_v3  ;;  %1414 = vmatprep.mubr.msk.f32.mxu1 (!%p423_p9), %vm1666_vm0, %v1667_v6  ;;  %s2050_s0 = sld [smem:[#allocation6_spill]] (!%p423_p9)  ;;  %vm573_vm2 = vcmask (!%p423_p9), 130048   ;;  %vm648_vm3 = vcmask (!%p423_p9), 64512   ;;  %v906_v43 = vld [vmem:[%s2031_s4] sm:$0xff] (!%p423_p9)  ;;  %v907_v44 = vld [vmem:[%s2031_s4 + $0x8] sm:$0xff] (!%p423_p9) }
  0x15   : > { %1427 = vmatprep.subr.mxu0 (!%p423_p9), %v1667_v6  ;;  %1429 = vmatprep.mubr.msk.f32.mxu0 (!%p423_p9), %vm1666_vm0, %v1667_v6  ;;  %s2051_s3 = sld [smem:[#allocation9_spill]] (!%p423_p9)  ;;  %s1668_s21 = smov (!%p423_p9), 112   ;;  %v908_v45 = vld [vmem:[%s2031_s4 + $0x10] sm:$0xff] (!%p423_p9)  ;;  %v1501_v46 = vpack.c.bf16 (!%p423_p9), %v907_v44, %v906_v43  ;;  %v909_v47 = vld [vmem:[%s2031_s4 + $0x18] sm:$0xff] (!%p423_p9)  ;;  %v1353_v55 = vld [vmem:[%s2032_s5] ss:$0 sm:$0xff] (!%p423_p9) }
  0x16   : > { %s1670_s26 = smov (!%p423_p9), 80   ;;  %s2052_s1 = sld [smem:[#allocation7_spill]] (!%p423_p9)  ;;  %v1504_v48 = vpack.c.bf16 (!%p423_p9), %v909_v47, %v908_v45 }
  0x17   : > { %s1672_s20 = smov (!%p423_p9), 64   ;;  %s467_s27 = sand.u32 (!%p423_p9), 1, %s1655_s30  }
  0x19   : > { %v479_v0 = vld [vmem:[%s2049_s2] sm:$0xff] (!%p423_p9)  ;;  %v480_v1 = vld [vmem:[%s2049_s2 + $0x8] sm:$0xff] (!%p423_p9)  ;;  %v481_v2 = vld [vmem:[%s2049_s2 + $0x10] sm:$0xff] (!%p423_p9) }
  0x1a   : > { %v1495_v4 = vpack.c.bf16 (!%p423_p9), %v480_v1, %v479_v0  ;;  %v482_v5 = vld [vmem:[%s2049_s2 + $0x18] sm:$0xff] (!%p423_p9) }
  0x1b   : > { %v1498_v7 = vpack.c.bf16 %v482_v5, %v481_v2  ;;  %s1819_s25 = scalar_select %p470_p10, %s1772_s17, 1  ;;  %v1344_v9 = vld [vmem:[%s2051_s3] ss:$0 sm:$0xff] }
  0x1c   : > { %1496 = vmatpush3.bf16.msra.mxu1 %v1495_v4  ;;  %v1021_v2 = vld [vmem:[%s2035_s8] sm:$0xff]  ;;  %v1022_v4 = vld [vmem:[%s2035_s8 + $0x8] sm:$0xff] }
  0x1d   : > { %1497 = vmatprep.subr.bf16.mxu1 %v1665_v3  ;;  %s1343_s22 = sshll.u32 %s1819_s25, 3  ;;  %s476_s18 = scalar_lea.vmem %s2052_s1, %s1819_s25  ;;  %v1507_v5 = vpack.c.bf16 %v1022_v4, %v1021_v2 }
  0x1e   : > { %s473_s28 = scalar_lea.vmem %s2050_s0, %s1343_s22  ;;  %s1669_s22 = smov 96   ;;  %v1346_v16 = vld [vmem:[%s476_s18] ss:$0 sm:$0xff] }
  0x1f   : > { %v1826_v8 = vld [vmem:[%s473_s28] sm:$0xff]  ;;  %s1671_s25 = smov 48   ;;  %s1342_s28 = sshll.u32 %s467_s27, 3 }
  0x20   : > { %1499 = vmatpush3.bf16.msra.mxu1 %v1498_v7  ;;  %v1024_v7 = vld [vmem:[%s2035_s8 + $0x18] sm:$0xff]  ;;  %s1257_s18 = scalar_lea.sflag [#allocation3], %s467_s27 }
  0x21   : > { %1417 = vmatprep.subr.mxu1 %v1667_v6 }
  0x23   : > { %1415 = vmatmul.mubr.msk.f32.vlgmr.msra.gmra.mrb[0].mxu1 %vm490_vm1, %v1826_v8 }
  0x24   : > { %1419 = vmatprep.mubr.msk.f32.mxu1 %vm1666_vm0, %v1667_v6 }
  0xf6   : > { %v560_v10 = vpop.f32.mrb[0].mxu1 }
  0xf7   : > { %v561_v11 = vadd.f32 %v1344_v9, %v560_v10  ;;  %v1416_v12 = vpop.f32.mrb[1].mxu1 }
  0xf9   : > { %736 = vrot.lane.b32.xlu1 %v561_v11, %s1668_s21  ;;  %571 = vrot.lane.b32.xlu0 %v561_v11, %s1669_s22  ;;  %s1673_s21 = smov 16   ;;  %s1363_s22 = sshll.u32 %s1772_s17, 7 }
  0xfa   : > { %s1984_s3 = scalar_lea.hbm %s2041_s14, %s1363_s22  ;;  %s1675_s17 = smov [#allocation2]  }
  0xfd   : > { %738 = vrot.lane.b32.xlu0 %v561_v11, %s1670_s26  ;;  %s469_s26 = scalar_lea.vmem [#allocation2], %s1342_s28  ;;  %s1605_s28 = sshll.u32 %s1675_s17, 4  ;;  %s1606_s28 = int_to_ptr.vmem [resolvable:$false] %s1605_s28 }
  0xfe   : > { %s1270_s0 = sshll.u32 %s469_s26, 4  ;;  %s1986_s0 = int_to_ptr.vmem [resolvable:$true] %s1270_s0 }
  0xff   : > { %p1608_p0 = scmp.lt.s32.totalorder %s1986_s0, %s1606_s28 }
 0x16b   : > { %v572_v13 = vpop.permute.xlu0 %571  ;;  %v737_v15 = vpop.permute.xlu1 %736 }
 0x16c   : > { %1418 = vmatpush3.xpose.msk.msra.mxu1 %vm573_vm2, %v572_v13  ;;  %v1355_v13 = vld [vmem:[%s2033_s6] ss:$0 sm:$0xff] }
 0x16d   : > { %1422 = vmatprep.subr.mxu1 %v1667_v6 }
 0x16f   : > { %1420 = vmatmul.mubr.msk.f32.vlgmr.msra.gmra.mrb[2].mxu1 %vm573_vm2, %v561_v11  ;;  %v739_v14 = vpop.permute.xlu0 %738 }
 0x170   : > { %1428 = vmatpush3.xpose.msk.msra.mxu0 %vm573_vm2, %v739_v14  ;;  %1424 = vmatprep.mubr.msk.f32.mxu1 %vm1666_vm0, %v1667_v6 }
 0x171   : > { %1512 = vmatprep.subr.bf16.mxu0 %v1665_v3 }
 0x173   : > { %1430 = vmatmul.mubr.msk.f32.vlgmr.msra.gmra.mrb[0].mxu0 %vm573_vm2, %v737_v15  ;;  %v1356_v15 = vld [vmem:[%s2034_s7] ss:$0 sm:$0xff] }
 0x174   : > { %1491 = vmatprep.mubr.msk.f32.mxu0 %vm1666_vm0, %v1667_v6 }
 0x242   : > { %v644_v17 = vpop.f32.mrb[2].mxu1 }
 0x243   : > { %v645_v18 = vadd.f32 %v1346_v16, %v644_v17  ;;  %v1421_v19 = vpop.f32.mrb[3].mxu1 }
 0x244   : > { %v1133_v19 = vld [vmem:[%s2037_s10 + $0x8] sm:$0xff] }
 0x245   : > { %v649_v20 = vsel %vm648_vm3, %v645_v18, -inf }
 0x246   : > { %v810_v21 = vpop.f32.mrb[0].mxu0  ;;  %650 = vmax.xlane.f32.xlu1 %v649_v20 }
 0x247   : > { %v811_v22 = vadd.f32 %v1346_v16, %v810_v21  ;;  %v1431_v23 = vpop.f32.mrb[1].mxu0  ;;  %v1134_v21 = vld [vmem:[%s2037_s10 + $0x10] sm:$0xff] }
 0x249   : > { %v814_v24 = vsel %vm648_vm3, %v811_v22, -inf }
 0x24a   : > { %815 = vmax.xlane.f32.xlu0 %v814_v24  ;;  %v1136_v24 = vld [vmem:[%s2037_s10 + $0x20] sm:$0xff] }
 0x2d3   : > { %v651_v25 = vpop.xlane.xlu1 %650 }
 0x2d4   : > { %v652_v26 = vsub.f32 %v645_v18, %v651_v25  ;;  %v1132_v18 = vld [vmem:[%s2037_s10] sm:$0xff]  ;;  %v1137_v25 = vld [vmem:[%s2037_s10 + $0x28] sm:$0xff] }
 0x2d5   : > { %v1513_v20 = vpack.c.bf16 %v1133_v19, %v1132_v18 }
 0x2d6   : > { %v653_v27 = vmul.f32 1.442695, %v652_v26  ;;  %v1519_v26 = vpack.c.bf16 %v1137_v25, %v1136_v24  ;;  %v1361_v25 = vld [vmem:[%s2040_s13] ss:$0 sm:$0xff] }
 0x2d7   : > { %v816_v28 = vpop.xlane.xlu0 %815  ;;  %1514 = vmatpush3.bf16.msra.mxu0 %v1513_v20 }
 0x2d8   : > { %1585 = vpow2.f32 %v653_v27  ;;  %v817_v29 = vsub.f32 %v811_v22, %v816_v28  ;;  %1515 = vmatprep.subr.bf16.mxu0 %v1665_v3  ;;  %v1135_v22 = vld [vmem:[%s2037_s10 + $0x18] sm:$0xff]  ;;  %v1138_v27 = vld [vmem:[%s2037_s10 + $0x30] sm:$0xff] }
 0x2d9   : > { %v1516_v23 = vpack.c.bf16 %v1135_v22, %v1134_v21  ;;  %v1139_v28 = vld [vmem:[%s2037_s10 + $0x38] sm:$0xff] }
 0x2da   : > { %v818_v30 = vmul.f32 1.442695, %v817_v29  ;;  %v1522_v29 = vpack.c.bf16 %v1139_v28, %v1138_v27 }
 0x2db   : > { %1517 = vmatpush3.bf16.msra.mxu0 %v1516_v23 }
 0x2dc   : > { %1587 = vpow2.f32 %v818_v30  ;;  %1518 = vmatprep.subr.bf16.mxu0 %v1665_v3  ;;  %v1140_v30 = vld [vmem:[%s2037_s10 + $0x40] sm:$0xff] }
 0x2df   : > { %1520 = vmatpush3.bf16.msra.mxu0 %v1519_v26 }
 0x2e0   : > { %1521 = vmatprep.subr.bf16.mxu0 %v1665_v3 }
 0x2e2   : > { %v1586_v31 = vpop.eup %1585 }
 0x2e3   : > { %v655_v32 = vsel %vm648_vm3, %v1586_v31, 0.0  ;;  %1523 = vmatpush3.bf16.msra.mxu0 %v1522_v29 }
 0x2e4   : > { %656 = vadd.xlane.f32.xlu0 %v655_v32  ;;  %1524 = vmatprep.subr.bf16.mxu0 %v1665_v3 }
 0x2e6   : > { %v1588_v33 = vpop.eup %1587 }
 0x2e7   : > { %v820_v34 = vsel %vm648_vm3, %v1588_v33, 0.0 }
 0x2e8   : > { %821 = vadd.xlane.f32.xlu1 %v820_v34  ;;  %v1143_v34 = vld [vmem:[%s2037_s10 + $0x58] sm:$0xff] }
 0x2f9   : > { %825 = vrot.lane.b32.xlu1 %v561_v11, %s1671_s25  ;;  %s1601_s25 = scalar_lea.vmem %s1986_s0, 128 }
 0x2fa   : > { %660 = vrot.lane.b32.xlu0 %v561_v11, %s1672_s20  ;;  %p1602_p11 = scmp.ne.s32.totalorder %s1986_s0, %s1601_s25  ;;  %s1607_s20 = scalar_lea.vmem %s1606_s28, 256 }
 0x2fb   : > { %p1609_p1 = scmp.lt.s32.totalorder %s1607_s20, %s1601_s25 }
 0x2fc   : > { %p1603_p12 = pnand %p1602_p11, %p1789_p5 }
 0x2fd   : > { %p1610_p2 = por %p1609_p1, %p1608_p0 }
 0x2fe   : > { %p1604_p13 = pneg %p1603_p12 }
 0x300   : > { %p1611_p3 = pnand %p1610_p2, %p1604_p13 }
 0x371   : > { %v657_v35 = vpop.xlane.xlu0 %656 }
 0x372   : > { %1589 = vrcp.f32 %v657_v35 }
 0x375   : > { %v661_v36 = vpop.permute.xlu0 %660  ;;  %v822_v37 = vpop.xlane.xlu1 %821 }
 0x376   : > { %1591 = vrcp.f32 %v822_v37  ;;  %1423 = vmatpush3.msra.mxu1 %v661_v36  ;;  %v1144_v36 = vld [vmem:[%s2037_s10 + $0x60] sm:$0xff]  ;;  %v1145_v37 = vld [vmem:[%s2037_s10 + $0x68] sm:$0xff] }
 0x377   : > { %1432 = vmatprep.subr.mxu1 %v1667_v6 }
 0x379   : > { %v826_v40 = vpop.permute.xlu1 %825 }
 0x37c   : > { %v1590_v38 = vpop.eup %1589 }
 0x37d   : > { %v659_v39 = vmul.f32 %v1590_v38, %v1586_v31  ;;  %v1141_v31 = vld [vmem:[%s2037_s10 + $0x48] sm:$0xff]  ;;  %v1531_v38 = vpack.c.bf16 %v1145_v37, %v1144_v36 }
 0x37e   : > { %v1525_v32 = vpack.c.bf16 %v1141_v31, %v1140_v30 }
 0x37f   : > { %1425 = vmatmul.mubr.msk.f32.vlgmr.msra.gmra.mrb[4].mxu1 %vm648_vm3, %v659_v39  ;;  %v1146_v39 = vld [vmem:[%s2037_s10 + $0x70] sm:$0xff] }
 0x380   : > { %v1592_v41 = vpop.eup %1591  ;;  %1433 = vmatpush3.msra.mxu1 %v826_v40  ;;  %1434 = vmatprep.mubr.msk.f32.mxu1 %vm1666_vm0, %v1667_v6  ;;  %v1147_v40 = vld [vmem:[%s2037_s10 + $0x78] sm:$0xff] }
 0x381   : > { %v824_v42 = vmul.f32 %v1592_v41, %v1588_v33  ;;  %1500 = vmatprep.subr.bf16.mxu1 %v1665_v3  ;;  %1526 = vmatpush3.bf16.msra.mxu0 %v1525_v32  ;;  %v1142_v33 = vld [vmem:[%s2037_s10 + $0x50] sm:$0xff]  ;;  %v1534_v41 = vpack.c.bf16 %v1147_v40, %v1146_v39 }
 0x382   : > { %1527 = vmatprep.subr.bf16.mxu0 %v1665_v3  ;;  %v1528_v35 = vpack.c.bf16 %v1143_v34, %v1142_v33 }
 0x383   : > { %1435 = vmatmul.mubr.msk.f32.vlgmr.msra.gmra.mrb[6].mxu1 %vm648_vm3, %v824_v42  ;;  %v1357_v42 = vld [vmem:[%s2036_s9] ss:$0 sm:$0xff] }
 0x384   : > { %1445 = vmatprep.mubr.msk.f32.mxu1 %vm1666_vm0, %v1667_v6  ;;  %1502 = vmatpush3.bf16.msra.mxu1 %v1501_v46 }
 0x385   : > { %1503 = vmatprep.subr.bf16.mxu1 %v1665_v3  ;;  %1529 = vmatpush3.bf16.msra.mxu0 %v1528_v35 }
 0x386   : > { %1530 = vmatprep.subr.bf16.mxu0 %v1665_v3 }
 0x388   : > { %1505 = vmatpush3.bf16.msra.mxu1 %v1504_v48 }
 0x389   : > { %1506 = vmatprep.subr.bf16.mxu1 %v1665_v3  ;;  %1532 = vmatpush3.bf16.msra.mxu0 %v1531_v38 }
 0x38a   : > { %1533 = vmatprep.subr.bf16.mxu0 %v1665_v3 }
 0x38d   : > { %1535 = vmatpush3.bf16.msra.mxu0 %v1534_v41 }
 0x452   : > { %v732_v49 = vpop.f32.mrb[4].mxu1 }
 0x453   : > { %v1426_v50 = vpop.f32.mrb[5].mxu1 }
 0x456   : > { %v897_v51 = vpop.f32.mrb[6].mxu1 }
 0x457   : > { %902 = vrot.lane.b32.xlu1 %v897_v51, %s1673_s21  ;;  %v1436_v52 = vpop.f32.mrb[7].mxu1 }
 0x4c9   : > { %v903_v53 = vpop.permute.xlu1 %902 }
 0x4ca   : > { %v905_v54 = vsel %vm573_vm2, %v732_v49, %v903_v53 }
 0x4cb   : > { %1446 = vmatmul.mubr.msk.f32.vlgmr.msra.gmra.mrb[8].mxu1 %vm490_vm1, %v905_v54 }
 0x4cc   : > { %1456 = vmatprep.mubr.msk.f32.mxu1 %vm1666_vm0, %v1667_v6  ;;  %1508 = vmatpush3.bf16.msra.mxu1 %v1507_v5  ;;  %v1023_v6 = vld [vmem:[%s2035_s8 + $0x10] sm:$0xff] }
 0x4cd   : > { %1509 = vmatprep.subr.bf16.mxu1 %v1665_v3 }
 0x59e   : > { %v986_v56 = vpop.f32.mrb[8].mxu1 }
 0x59f   : > { %v987_v57 = vadd.f32 %v1353_v55, %v986_v56  ;;  %v1447_v58 = vpop.f32.mrb[9].mxu1 }
 0x5a1   : > { %v990_v59 = vadd.f32 %v987_v57, %v1826_v8  ;;  %v1510_v8 = vpack.c.bf16 %v1024_v7, %v1023_v6 }
 0x5a3   : > { %v993_v60 = vsel %vm490_vm1, %v990_v59, 0.0  ;;  %1511 = vmatpush3.bf16.msra.mxu1 %v1510_v8  ;;  %v1359_v8 = vld [vmem:[%s2038_s11] ss:$0 sm:$0xff] }
 0x5a4   : > { %994 = vadd.xlane.f32.xlu0 %v993_v60 }
 0x631   : > { %v995_v61 = vpop.xlane.xlu0 %994 }
 0x632   : > { %v997_v62 = vmul.f32 0.03125, %v995_v61 }
 0x634   : > { %v998_v63 = vsub.f32 %v990_v59, %v997_v62 }
 0x636   : > { %v999_v0 = vmul.f32 %v998_v63, %v998_v63 }
 0x638   : > { %v1000_v1 = vsel %vm490_vm1, %v999_v0, 0.0 }
 0x639   : > { %1001 = vadd.xlane.f32.xlu1 %v1000_v1  ;;  %v1674_v1 = vmov -1.0  }
 0x6c6   : > { %v1002_v9 = vpop.xlane.xlu1 %1001 }
 0x6c7   : > { %v1003_v10 = vmul.f32 0.03125, %v1002_v9 }
 0x6c9   : > { %v1004_v11 = vadd.f32 1e-12, %v1003_v10 }
 0x6cb   : > { %1593 = vrsqrt.f32 %v1004_v11 }
 0x6d5   : > { %v1594_v12 = vpop.eup %1593 }
 0x6d6   : > { %v1006_v14 = vmul.f32 %v1594_v12, %v998_v63 }
 0x6d8   : > { %v1013_v16 = vmul.f32 %v1355_v13, %v1006_v14 }
 0x6da   : > { %v1905_v17 = vadd.f32 %v1356_v15, %v1013_v16 }
 0x6dc   : > { %1457 = vmatmul.mubr.msk.f32.vlgmr.msra.gmra.mrb[10].mxu1 %vm490_vm1, %v1905_v17 }
 0x7af   : > { %v1101_v43 = vpop.f32.mrb[10].mxu1 }
 0x7b0   : > { %v1102_v44 = vadd.f32 %v1357_v42, %v1101_v43  ;;  %v1458_v45 = vpop.f32.mrb[11].mxu1 }
 0x7b2   : > { %v1106_v46 = vmul.f32 0.70710677, %v1102_v44  ;;  %v1105_v5 = vmul.f32 0.5, %v1102_v44 }
 0x7b4   : > { %v1109_v47 = vand.u32 2147483647, %v1106_v46  ;;  %vm1107_vm4 = vcmp.ge.f32.partialorder %v1106_v46, 0.0 }
 0x7b5   : > { %v1108_v2 = vsel %vm1107_vm4, 1.0, %v1674_v1 }
 0x7b6   : > { %v1110_v3 = vmul.f32 0.3275911, %v1109_v47  ;;  %v1123_v49 = vsub.f32 0.0, %v1109_v47 }
 0x7b8   : > { %v1111_v48 = vadd.f32 1.0, %v1110_v3  ;;  %v1124_v51 = vmul.f32 %v1123_v49, %v1109_v47 }
 0x7ba   : > { %1595 = vrcp.f32 %v1111_v48  ;;  %v1125_v54 = vmul.f32 1.442695, %v1124_v51 }
 0x7bc   : > { %1597 = vpow2.f32 %v1125_v54 }
 0x7c4   : > { %v1596_v50 = vpop.eup %1595 }
 0x7c5   : > { %v1114_v52 = vmul.f32 1.0614054, %v1596_v50 }
 0x7c6   : > { %v1598_v62 = vpop.eup %1597 }
 0x7c7   : > { %v1115_v53 = vadd.f32 -1.4531521, %v1114_v52 }
 0x7c9   : > { %v1116_v55 = vmul.f32 %v1596_v50, %v1115_v53 }
 0x7cb   : > { %v1117_v56 = vadd.f32 1.4214138, %v1116_v55 }
 0x7cd   : > { %v1118_v57 = vmul.f32 %v1596_v50, %v1117_v56 }
 0x7cf   : > { %v1119_v58 = vadd.f32 -0.28449672, %v1118_v57 }
 0x7d1   : > { %v1120_v59 = vmul.f32 %v1596_v50, %v1119_v58 }
 0x7d3   : > { %v1121_v60 = vadd.f32 0.2548296, %v1120_v59 }
 0x7d5   : > { %v1122_v61 = vmul.f32 %v1596_v50, %v1121_v60 }
 0x7d7   : > { %v1127_v63 = vmul.f32 %v1598_v62, %v1122_v61 }
 0x7d9   : > { %v1128_v0 = vsub.f32 1.0, %v1127_v63 }
 0x7db   : > { %v1129_v4 = vmul.f32 %v1128_v0, %v1108_v2 }
 0x7dd   : > { %v1130_v6 = vadd.f32 1.0, %v1129_v4 }
 0x7df   : > { %v1131_v7 = vmul.f32 %v1130_v6, %v1105_v5 }
 0x7e1   : > { %1492 = vmatmul.mubr.f32.vlgmr.msra.gmra.mrb[2].mxu0 %v1131_v7 }
 0x8b4   : > { %v1221_v9 = vpop.f32.mrb[2].mxu0 }
 0x8b5   : > { %v1222_v10 = vadd.f32 %v1359_v8, %v1221_v9  ;;  %v1493_v11 = vpop.f32.mrb[3].mxu0 }
 0x8b7   : > { %v1225_v12 = vadd.f32 %v1222_v10, %v1905_v17  ;;  %v1360_v17 = vld [vmem:[%s2039_s12] ss:$0 sm:$0xff] }
 0x8b9   : > { %v1228_v13 = vsel %vm490_vm1, %v1225_v12, 0.0 }
 0x8ba   : > { %1229 = vadd.xlane.f32.xlu0 %v1228_v13 }
 0x947   : > { %v1230_v14 = vpop.xlane.xlu0 %1229 }
 0x948   : > { %v1231_v15 = vmul.f32 0.03125, %v1230_v14 }
 0x94a   : > { %v1232_v16 = vsub.f32 %v1225_v12, %v1231_v15 }
 0x94c   : > { %v1233_v18 = vmul.f32 %v1232_v16, %v1232_v16 }
 0x94e   : > { %v1234_v19 = vsel %vm490_vm1, %v1233_v18, 0.0 }
 0x94f   : > { %1235 = vadd.xlane.f32.xlu0 %v1234_v19 }
 0x9dc   : > { %v1236_v20 = vpop.xlane.xlu0 %1235 }
 0x9dd   : > { %v1237_v21 = vmul.f32 0.03125, %v1236_v20 }
 0x9df   : > { %v1238_v22 = vadd.f32 1e-12, %v1237_v21 }
 0x9e1   : > { %1599 = vrsqrt.f32 %v1238_v22 }
 0x9eb   : > { %v1600_v23 = vpop.eup %1599 }
 0x9ec   : > { %v1240_v24 = vmul.f32 %v1600_v23, %v1232_v16 }
 0x9ee   : > { %v1247_v26 = vmul.f32 %v1360_v17, %v1240_v24 }
 0x9f0   : > { %v1254_v27 = vadd.f32 %v1361_v25, %v1247_v26 }
 0x9f2   : > { %1255 = vst.msk [vmem:[%s469_s26] sm:$0xff] %vm490_vm1, %v1254_v27 }
 0x9f3   : > { %1614 = shalt.err (!%p1611_p3)
}
 0x9f4   : > { %s1615_s1 = scalar_lea.hbm %s1984_s3, 128  ;;  %s1619_s21 = scalar_lea.hbm %s2041_s14, 256 }
 0x9f5   : > { %p1616_p4 = scmp.ne.s32.totalorder %s1984_s3, %s1615_s1  ;;  %p1620_p9 = scmp.lt.u32.totalorder %s1984_s3, %s2041_s14 }
 0x9f6   : > { %p1621_p10 = scmp.lt.u32.totalorder %s1619_s21, %s1615_s1  ;;  %p1623_p12 = scmp.lt.u32.totalorder %s1615_s1, %s1984_s3 }
 0x9f7   : > { %p1617_p7 = pnand %p1616_p4, %p1789_p5 }
 0x9f8   : > { %p1622_p11 = por %p1621_p10, %p1620_p9 }
 0x9f9   : > { %p1618_p8 = pneg %p1617_p7 }
 0x9fa   : > { %p1624_p13 = por %p1623_p12, %p1622_p11 }
 0x9fc   : > { %p1625_p0 = pnand %p1624_p13, %p1618_p8 }
 0x9fe   : > { %1628 = shalt.err (!%p1625_p0)
}
 0x9ff   : > { %1536 = dma.vmem_to_hbm [thread:$0]  (%p1789_p5), %s1986_s0, 128, %s1984_s3, %s1257_s18  }
 0xa00 PF: > { %p1542_p1 = scmp.ge.s32.totalorder %s1663_s16, 2  ;;  %s1282_s25 = sand.u32 1, %s1651_s29  }
 0xa01   : > { %s1283_s17 = scalar_lea.sflag [#allocation3], %s1282_s25 }
 0xa02   : > { %p1539_p2 = pnand %p1542_p1, %p1793_p6 }
 0xa04   : > { %1646 = dma.done.wait (!%p1539_p2), %s1283_s17, 128  }
 0xa05   : > { %1648 = vsyncadd (!%p1539_p2), %s1283_s17, 4294967168  ;;  %s2053_s28 = sld [smem:[#allocation5_spill]]  ;;  %p24_p3 = scmp.ge.s32.totalorder %s1776_s19, 4  }
 0xa06   : > { %s2054_s29 = smov %s1655_s30  ;;  %s2055_s30 = smov %s1659_s15 }
 0xa07   : > { %s2057_s16 = smov %s1776_s19  ;;  %26 = sbr.rel (!%p24_p3) target bundleno = 8 (0x8), region = 114 }
 0xa0b   : > { %s2056_s15 = smov %s2053_s28 }
 0xa0e   :  { %1288 = vsyncpa [#allocation3], 1 }
 0xa0f   :  { %1290 = vsyncpa [#allocation3 + $0x1], 1 }

</bundles_post_ra>
